<compile_context>
chip_gen: v5e
topology: v5e:2x2
jax: 0.10.0
libtpu: 0.0.40
codegen_flags: <defaults>
</compile_context>

<pallas_src>
import jax
import jax.numpy as jnp
from jax.experimental import pallas as pl
from jax.experimental.pallas import tpu as pltpu


def _round_up(x: int, m: int) -> int:
    return ((x + m - 1) // m) * m


def _pick_tile_b(B: int, m_block: int, M: int) -> int:
    """Pick a batch tile: multiple of 8 (or full B), VMEM-budgeted, multi-step."""
    if B <= 8:
        return B  # full-dim block is always legal
    # Double-buffered in (m_block cols) + out (M cols), int32.
    bytes_per_row = 4 * (m_block + M)
    budget = 12 * 1024 * 1024  # leaves headroom under v5e's 16 MiB scoped VMEM
    max_rows = max(8, budget // (2 * bytes_per_row))
    # Keep the batch grid at >= ~4 steps so v7x can shard across both TCs.
    multicore_cap = _round_up(pl.cdiv(B, 4), 8)
    tile = min(B, max_rows, multicore_cap)
    tile = max(8, (tile // 8) * 8)
    return tile


def _truncate_copy_kernel(tok_ref, out_ref):
    # Input tile is (tile_b, m_block) (lane-padded); output tile is (tile_b, M).
    m = out_ref.shape[-1]
    out_ref[...] = tok_ref[:, :m]


def truncate_transform(tokens: jax.Array, lengths: jax.Array, max_seq_len: int):
    """Dense equivalent of TruncateTransform.forward.

    tokens:  int32 [B, S]  (padded token ids)
    lengths: int32 [B, 1]  (valid length per row)
    returns: (int32 [B, min(S, max_seq_len)], int32 [B, 1])
    """
    assert max_seq_len > 0
    B, S = tokens.shape
    M = min(max_seq_len, S)

    # Length clamp is a trivial elementwise min — keep it in the wrapper.
    out_len = jnp.minimum(lengths, jnp.int32(M))

    # No-op path: nothing to truncate, skip the copy entirely.
    if M == S:
        return tokens, out_len

    # Lane-dense input block width: multiple of 128 when possible, else full S.
    m_block = min(_round_up(M, 128), S)
    tile_b = _pick_tile_b(B, m_block, M)
    grid = (pl.cdiv(B, tile_b),)

    out_tok = pl.pallas_call(
        _truncate_copy_kernel,
        out_shape=jax.ShapeDtypeStruct((B, M), tokens.dtype),
        grid=grid,
        in_specs=[pl.BlockSpec((tile_b, m_block), lambda i: (i, 0))],
        out_specs=pl.BlockSpec((tile_b, M), lambda i: (i, 0)),
        compiler_params=pltpu.CompilerParams(
            dimension_semantics=("parallel",),
        ),
        cost_estimate=pl.CostEstimate(
            flops=0,
            transcendentals=0,
            bytes_accessed=4 * B * (m_block + M),
        ),
    )(tokens)

    return out_tok, out_len


def _reference(tokens, lengths, max_seq_len):
    M = min(max_seq_len, tokens.shape[1])
    return tokens[:, :M], jnp.minimum(lengths, M)


def _check(tokens, lengths, max_seq_len):
    out_tok, out_len = truncate_transform(tokens, lengths, max_seq_len)
    jax.block_until_ready(out_tok)
    jax.block_until_ready(out_len)
    ref_tok, ref_len = _reference(tokens, lengths, max_seq_len)
    assert out_tok.shape == ref_tok.shape, (out_tok.shape, ref_tok.shape)
    assert jnp.array_equal(out_tok, ref_tok)
    assert jnp.array_equal(out_len, ref_len)


if __name__ == "__main__":
    key = jax.random.PRNGKey(0)
    k1, k2, k3, k4, k5, k6 = jax.random.split(key, 6)

    # Case 1: tiny demo shapes matching the module's List[List[int]] use case.
    B, S, MAX = 2, 8, 5
    tokens = jax.random.randint(k1, (B, S), 0, 1000, dtype=jnp.int32)
    lengths = jax.random.randint(k2, (B, 1), 1, S + 1, dtype=jnp.int32)
    _check(tokens, lengths, MAX)

    # Case 2: "read only M (lane-padded) of S columns" path, multi-step grid.
    B2, S2, MAX2 = 16, 384, 200
    tokens2 = jax.random.randint(k3, (B2, S2), 0, 30000, dtype=jnp.int32)
    lengths2 = jax.random.randint(k4, (B2, 1), 1, S2 + 1, dtype=jnp.int32)
    _check(tokens2, lengths2, MAX2)

    # Case 3: partial last batch block (B=12, tile_b=8 -> masked final block).
    B3, S3, MAX3 = 12, 256, 130
    tokens3 = jax.random.randint(k5, (B3, S3), 0, 30000, dtype=jnp.int32)
    lengths3 = jax.random.randint(k6, (B3, 1), 1, S3 + 1, dtype=jnp.int32)
    _check(tokens3, lengths3, MAX3)

    # Case 4: no-op short-circuit path (max_seq_len >= S).
    _check(tokens3, lengths3, 512)

    print("KERNEL_OK")
</pallas_src>

<mosaic_0001>
module attributes {stable_mosaic.version = 11 : i64} {
  func.func @_truncate_copy_kernel(%arg0: i32, %arg1: memref<2x8xi32, #tpu.memory_space<vmem>>, %arg2: memref<2x5xi32, #tpu.memory_space<vmem>>) attributes {dimension_semantics = [#tpu.dimension_semantics<parallel>], iteration_bounds = array<i64: 1>, scalar_prefetch = 0 : i64, scratch_operands = 0 : i64, tpu.core_type = #tpu.core_type<tc>, window_params = [{transform_indices = @transform_0, window_bounds = array<i64: 2, 8>}, {transform_indices = @transform_1, window_bounds = array<i64: 2, 5>}]} {
    %c0 = arith.constant 0 : index
    %c0_0 = arith.constant 0 : index
    %0 = vector.load %arg1[%c0, %c0_0] : memref<2x8xi32, #tpu.memory_space<vmem>>, vector<2x5xi32>
    %c0_1 = arith.constant 0 : index
    %c0_2 = arith.constant 0 : index
    %1 = vector.load %arg2[%c0_1, %c0_2] : memref<2x5xi32, #tpu.memory_space<vmem>>, vector<2x5xi32>
    tpu.vector_store %arg2[%c0_1, %c0_2], %0 {strides = array<i32>} : memref<2x5xi32, #tpu.memory_space<vmem>>, vector<2x5xi32>,
    return
  }
  func.func @transform_0(%arg0: i32) -> (i32, i32) {
    %c0_i32 = arith.constant 0 : i32
    %c0_i32_0 = arith.constant 0 : i32
    return %arg0, %c0_i32 : i32, i32
  }
  func.func @transform_1(%arg0: i32) -> (i32, i32) {
    %c0_i32 = arith.constant 0 : i32
    %c0_i32_0 = arith.constant 0 : i32
    return %arg0, %c0_i32 : i32, i32
  }
}

</mosaic_0001>

<bundles_post_ra>
// kernel: tpu_custom_call.1
= control target key start
LH: loop header
LB: loop body
LE: loop exit
PB: predicated region body
PF: predicated region fallthrough
CT: control target
= control target key end

     0   :  { %6 = vsyncpa [#allocation3], 0  ;;  %s115_s0 = inlined_call_operand.hbm [shape: s32[2,8], index: 0, kind: input, shape index: {}]   ;;  %s116_s1 = inlined_call_operand.hbm [shape: s32[2,5], index: 1, kind: output, shape index: {}]  }
   0x1   :  { %7 = vsyncpa [#allocation4], 0  ;;  %s13_s8 = sshll.u32 %s115_s0, 4  ;;  %s97_s9 = smov [#allocation2]   ;;  %s14_s8 = int_to_ptr.hbm [resolvable:$true] %s13_s8 }
   0x2   :  { %s15_s10 = sshll.u32 %s97_s9, 4  ;;  %s16_s10 = int_to_ptr.vmem [resolvable:$true] %s15_s10 }
   0x3   :  { %18 = dma.hbm_to_vmem [thread:$0]  %s14_s8, 32, %s16_s10, [#allocation3]  }
   0x4   :  { %93 = dma.done.wait [#allocation3], 32  }
   0x5   :  { %94 = vsyncadd [#allocation3], 4294967264  ;;  %s98_s11 = smov [#allocation5]   ;;  %s33_s15 = sshll.u32 %s116_s1, 4  ;;  %vm24_vm0 = vcmask 33792   ;;  %s34_s15 = int_to_ptr.hbm [resolvable:$true] %s33_s15 }
   0x6   :  { %s31_s12 = sshll.u32 %s98_s11, 4  ;;  %v23_v0 = vld [vmem:[#allocation2] sm:$0x3]  ;;  %s32_s12 = int_to_ptr.vmem [resolvable:$true] %s31_s12 }
   0x7   :  { %25 = vst.msk [vmem:[#allocation5] sm:$0x3] %vm24_vm0, %v23_v0 }
   0x8   :  { %36 = dma.vmem_to_hbm [thread:$0]  %s32_s12, 32, %s34_s15, [#allocation4]  }
   0x9   :  { %95 = dma.done.wait [#allocation4], 32  }
   0xa   :  { %96 = vsyncadd [#allocation4], 4294967264 }
   0xb   :  { %41 = vsyncpa [#allocation3], 1 }
   0xc   :  { %42 = vsyncpa [#allocation4], 1 }

</bundles_post_ra>
